<compile_context>
chip_gen: v7x
topology: tpu7x:2x2x1
jax: 0.10.0
libtpu: 0.0.40
codegen_flags: <defaults>
</compile_context>

<pallas_src>
import jax
import jax.numpy as jnp
from jax.experimental import pallas as pl
from jax.experimental.pallas import tpu as pltpu

C_IN = 13
C1 = 32
C2 = 64
K = 5
PAD = 2
EPS = 1e-5


def _cnn_frontend_kernel(x_ref, w1_ref, s1_ref, t1_ref, w2_ref, s2_ref, t2_ref,
                         o_ref, pad1, y1, pad2, y2):
    # x_ref : (1, T, 13)   one sample, time-major (time=sublanes, chan=lanes)
    # w1_ref: (5, 13, 32)  conv1 taps as [k, Cin, Cout]
    # s1/t1 : (1, 32)      folded BN scale / shift (conv bias included)
    # w2_ref: (5, 32, 64)
    # s2/t2 : (1, 64)
    # o_ref : (1, T//4, 64)
    T = x_ref.shape[1]
    T2 = T // 2
    T4 = T // 4

    # ---- layer 1: Conv1d(13->32, k=5, pad=2) as 5 shifted MXU matmuls ----
    pad1[...] = jnp.zeros_like(pad1)
    pad1[PAD:PAD + T, :] = x_ref[0]
    acc1 = jnp.zeros((T, C1), jnp.float32)
    for k in range(K):                      # static, unrolled at trace time
        acc1 = acc1 + jnp.dot(pad1[k:k + T, :], w1_ref[k],
                              preferred_element_type=jnp.float32)
    # folded BatchNorm (eval) + conv bias + ReLU
    y1[...] = jnp.maximum(acc1 * s1_ref[...] + t1_ref[...], 0.0)

    # ---- MaxPool1d(2) over time: even/odd sublane-strided reads ----
    p1 = jnp.maximum(y1[pl.ds(0, T2, stride=2), :],
                     y1[pl.ds(1, T2, stride=2), :])

    # ---- layer 2: Conv1d(32->64, k=5, pad=2) ----
    pad2[...] = jnp.zeros_like(pad2)
    pad2[PAD:PAD + T2, :] = p1
    acc2 = jnp.zeros((T2, C2), jnp.float32)
    for k in range(K):
        acc2 = acc2 + jnp.dot(pad2[k:k + T2, :], w2_ref[k],
                              preferred_element_type=jnp.float32)
    y2[...] = jnp.maximum(acc2 * s2_ref[...] + t2_ref[...], 0.0)

    # ---- MaxPool1d(2) + write the (T//4, 64) output block ----
    o_ref[0] = jnp.maximum(y2[pl.ds(0, T4, stride=2), :],
                           y2[pl.ds(1, T4, stride=2), :])


def cnn_front_end_forward(x, params):
    """x: [B, 13*T] f32 -> [B, 64 * (T // 4)] f32 (matches torch flatten(1))."""
    (w1, b1, g1, be1, m1, v1, w2, b2, g2, be2, m2, v2) = params
    B, FM = x.shape
    T = FM // C_IN
    assert FM == C_IN * T and T % 4 == 0

    # time-major per-sample layout: [B, T, 13]
    xt = jnp.transpose(x.reshape(B, C_IN, T), (0, 2, 1))

    # conv weights as [k, Cin, Cout]
    w1k = jnp.transpose(w1, (2, 1, 0))      # (5, 13, 32)
    w2k = jnp.transpose(w2, (2, 1, 0))      # (5, 32, 64)

    # fold conv bias + eval-mode BatchNorm into per-channel scale/shift
    s1 = g1 / jnp.sqrt(v1 + EPS)
    t1 = (b1 - m1) * s1 + be1
    s2 = g2 / jnp.sqrt(v2 + EPS)
    t2 = (b2 - m2) * s2 + be2
    s1 = s1.reshape(1, C1).astype(jnp.float32)
    t1 = t1.reshape(1, C1).astype(jnp.float32)
    s2 = s2.reshape(1, C2).astype(jnp.float32)
    t2 = t2.reshape(1, C2).astype(jnp.float32)

    out = pl.pallas_call(
        _cnn_frontend_kernel,
        out_shape=jax.ShapeDtypeStruct((B, T // 4, C2), jnp.float32),
        grid_spec=pltpu.PrefetchScalarGridSpec(
            num_scalar_prefetch=0,
            grid=(B,),
            in_specs=[
                pl.BlockSpec((1, T, C_IN), lambda b: (b, 0, 0)),
                pl.BlockSpec((K, C_IN, C1), lambda b: (0, 0, 0)),
                pl.BlockSpec((1, C1), lambda b: (0, 0)),
                pl.BlockSpec((1, C1), lambda b: (0, 0)),
                pl.BlockSpec((K, C1, C2), lambda b: (0, 0, 0)),
                pl.BlockSpec((1, C2), lambda b: (0, 0)),
                pl.BlockSpec((1, C2), lambda b: (0, 0)),
            ],
            out_specs=pl.BlockSpec((1, T // 4, C2), lambda b: (b, 0, 0)),
            scratch_shapes=[
                pltpu.VMEM((T + 2 * PAD, C_IN), jnp.float32),       # pad1
                pltpu.VMEM((T, C1), jnp.float32),                   # y1
                pltpu.VMEM((T // 2 + 2 * PAD, C1), jnp.float32),    # pad2
                pltpu.VMEM((T // 2, C2), jnp.float32),              # y2
            ],
        ),
        compiler_params=pltpu.CompilerParams(
            dimension_semantics=("parallel",)),
    )(xt, w1k, s1, t1, w2k, s2, t2)

    # torch flatten(1) on [B, 64, T//4] is channel-major: index = c*(T//4) + t
    return jnp.transpose(out, (0, 2, 1)).reshape(B, C2 * (T // 4))


if __name__ == "__main__":
    key = jax.random.PRNGKey(0)
    keys = jax.random.split(key, 13)

    B, T = 2, 16                      # batch=2, seq=16 -> fm = 13*16 = 208
    x = jax.random.normal(keys[0], (B, C_IN * T), dtype=jnp.float32)

    # Conv1d / BatchNorm1d parameters (BN in eval mode with running stats)
    w1 = 0.1 * jax.random.normal(keys[1], (C1, C_IN, K), jnp.float32)
    b1 = 0.1 * jax.random.normal(keys[2], (C1,), jnp.float32)
    g1 = 1.0 + 0.1 * jax.random.normal(keys[3], (C1,), jnp.float32)
    be1 = 0.1 * jax.random.normal(keys[4], (C1,), jnp.float32)
    m1 = 0.1 * jax.random.normal(keys[5], (C1,), jnp.float32)
    v1 = 1.0 + 0.5 * jax.random.uniform(keys[6], (C1,), jnp.float32)

    w2 = 0.1 * jax.random.normal(keys[7], (C2, C1, K), jnp.float32)
    b2 = 0.1 * jax.random.normal(keys[8], (C2,), jnp.float32)
    g2 = 1.0 + 0.1 * jax.random.normal(keys[9], (C2,), jnp.float32)
    be2 = 0.1 * jax.random.normal(keys[10], (C2,), jnp.float32)
    m2 = 0.1 * jax.random.normal(keys[11], (C2,), jnp.float32)
    v2 = 1.0 + 0.5 * jax.random.uniform(keys[12], (C2,), jnp.float32)

    params = (w1, b1, g1, be1, m1, v1, w2, b2, g2, be2, m2, v2)

    y = cnn_front_end_forward(x, params)
    y = jax.block_until_ready(y)

    # pure-JAX reference (same eval-mode BN semantics)
    def ref_forward(x):
        xr = x.reshape(B, C_IN, T)
        dn = ("NCH", "OIH", "NCH")
        h = jax.lax.conv_general_dilated(xr, w1, (1,), [(PAD, PAD)],
                                         dimension_numbers=dn)
        h = h + b1[None, :, None]
        h = (g1[None, :, None] * (h - m1[None, :, None])
             / jnp.sqrt(v1[None, :, None] + EPS) + be1[None, :, None])
        h = jnp.maximum(h, 0.0)
        h = jnp.max(h.reshape(B, C1, T // 2, 2), axis=-1)
        h = jax.lax.conv_general_dilated(h, w2, (1,), [(PAD, PAD)],
                                         dimension_numbers=dn)
        h = h + b2[None, :, None]
        h = (g2[None, :, None] * (h - m2[None, :, None])
             / jnp.sqrt(v2[None, :, None] + EPS) + be2[None, :, None])
        h = jnp.maximum(h, 0.0)
        h = jnp.max(h.reshape(B, C2, T // 4, 2), axis=-1)
        return h.reshape(B, -1)

    y_ref = ref_forward(x)
    assert y.shape == (B, C2 * (T // 4))
    err = float(jnp.max(jnp.abs(y - y_ref)))
    assert jnp.allclose(y, y_ref, atol=1e-4, rtol=1e-4), err

    print("KERNEL_OK")
</pallas_src>

<mosaic_0001>
module attributes {stable_mosaic.version = 11 : i64} {
  func.func @_cnn_frontend_kernel(%arg0: i32, %arg1: memref<1x16x13xf32, #tpu.memory_space<vmem>>, %arg2: memref<5x13x32xf32, #tpu.memory_space<vmem>>, %arg3: memref<1x32xf32, #tpu.memory_space<vmem>>, %arg4: memref<1x32xf32, #tpu.memory_space<vmem>>, %arg5: memref<5x32x64xf32, #tpu.memory_space<vmem>>, %arg6: memref<1x64xf32, #tpu.memory_space<vmem>>, %arg7: memref<1x64xf32, #tpu.memory_space<vmem>>, %arg8: memref<1x4x64xf32, #tpu.memory_space<vmem>>, %arg9: memref<20x13xf32, #tpu.memory_space<vmem>>, %arg10: memref<16x32xf32, #tpu.memory_space<vmem>>, %arg11: memref<12x32xf32, #tpu.memory_space<vmem>>, %arg12: memref<8x64xf32, #tpu.memory_space<vmem>>) attributes {dimension_semantics = [#tpu.dimension_semantics<parallel>], iteration_bounds = array<i64: 2>, scalar_prefetch = 0 : i64, scratch_operands = 4 : i64, tpu.core_type = #tpu.core_type<tc>, window_params = [{transform_indices = @transform_0, window_bounds = array<i64: 1, 16, 13>}, {pipeline_mode = #tpu.pipeline_mode<synchronous>, transform_indices = @transform_1, window_bounds = array<i64: 5, 13, 32>}, {pipeline_mode = #tpu.pipeline_mode<synchronous>, transform_indices = @transform_2, window_bounds = array<i64: 1, 32>}, {pipeline_mode = #tpu.pipeline_mode<synchronous>, transform_indices = @transform_3, window_bounds = array<i64: 1, 32>}, {pipeline_mode = #tpu.pipeline_mode<synchronous>, transform_indices = @transform_4, window_bounds = array<i64: 5, 32, 64>}, {pipeline_mode = #tpu.pipeline_mode<synchronous>, transform_indices = @transform_5, window_bounds = array<i64: 1, 64>}, {pipeline_mode = #tpu.pipeline_mode<synchronous>, transform_indices = @transform_6, window_bounds = array<i64: 1, 64>}, {transform_indices = @transform_7, window_bounds = array<i64: 1, 4, 64>}]} {
    %cst = arith.constant 0.000000e+00 : f32
    %0 = vector.broadcast %cst : f32 to vector<20x13xf32>
    %c0 = arith.constant 0 : index
    %c0_0 = arith.constant 0 : index
    %1 = vector.load %arg9[%c0, %c0_0] : memref<20x13xf32, #tpu.memory_space<vmem>>, vector<20x13xf32>
    tpu.vector_store %arg9[%c0, %c0_0], %0 {strides = array<i32>} : memref<20x13xf32, #tpu.memory_space<vmem>>, vector<20x13xf32>,
    %c0_1 = arith.constant 0 : index
    %c0_2 = arith.constant 0 : index
    %c0_3 = arith.constant 0 : index
    %2 = vector.load %arg1[%c0_1, %c0_2, %c0_3] : memref<1x16x13xf32, #tpu.memory_space<vmem>>, vector<1x16x13xf32>
    %3 = vector.shape_cast %2 : vector<1x16x13xf32> to vector<16x13xf32>
    %c2 = arith.constant 2 : index
    %c0_4 = arith.constant 0 : index
    %4 = vector.load %arg9[%c2, %c0_4] : memref<20x13xf32, #tpu.memory_space<vmem>>, vector<16x13xf32>
    tpu.vector_store %arg9[%c2, %c0_4], %3 {strides = array<i32>} : memref<20x13xf32, #tpu.memory_space<vmem>>, vector<16x13xf32>,
    %cst_5 = arith.constant 0.000000e+00 : f32
    %5 = vector.broadcast %cst_5 : f32 to vector<16x32xf32>
    %c0_6 = arith.constant 0 : index
    %c0_7 = arith.constant 0 : index
    %6 = vector.load %arg9[%c0_6, %c0_7] : memref<20x13xf32, #tpu.memory_space<vmem>>, vector<16x13xf32>
    %c0_8 = arith.constant 0 : index
    %c0_9 = arith.constant 0 : index
    %c0_10 = arith.constant 0 : index
    %7 = vector.load %arg2[%c0_8, %c0_9, %c0_10] : memref<5x13x32xf32, #tpu.memory_space<vmem>>, vector<1x13x32xf32>
    %8 = vector.shape_cast %7 : vector<1x13x32xf32> to vector<13x32xf32>
    %cst_11 = arith.constant dense<0.000000e+00> : vector<16x32xf32>
    %9 = tpu.matmul %6, %8, %cst_11 {dimension_numbers = #tpu.dot_dimension_numbers<[1], [0], [0], [1], [0, 0, 1, 1], [], []>} : vector<16x13xf32>, vector<13x32xf32>, vector<16x32xf32> -> vector<16x32xf32>
    %10 = arith.addf %5, %9 : vector<16x32xf32>
    %c1 = arith.constant 1 : index
    %c0_12 = arith.constant 0 : index
    %11 = vector.load %arg9[%c1, %c0_12] : memref<20x13xf32, #tpu.memory_space<vmem>>, vector<16x13xf32>
    %c1_13 = arith.constant 1 : index
    %c0_14 = arith.constant 0 : index
    %c0_15 = arith.constant 0 : index
    %12 = vector.load %arg2[%c1_13, %c0_14, %c0_15] : memref<5x13x32xf32, #tpu.memory_space<vmem>>, vector<1x13x32xf32>
    %13 = vector.shape_cast %12 : vector<1x13x32xf32> to vector<13x32xf32>
    %cst_16 = arith.constant dense<0.000000e+00> : vector<16x32xf32>
    %14 = tpu.matmul %11, %13, %cst_16 {dimension_numbers = #tpu.dot_dimension_numbers<[1], [0], [0], [1], [0, 0, 1, 1], [], []>} : vector<16x13xf32>, vector<13x32xf32>, vector<16x32xf32> -> vector<16x32xf32>
    %15 = arith.addf %10, %14 : vector<16x32xf32>
    %c2_17 = arith.constant 2 : index
    %c0_18 = arith.constant 0 : index
    %16 = vector.load %arg9[%c2_17, %c0_18] : memref<20x13xf32, #tpu.memory_space<vmem>>, vector<16x13xf32>
    %c2_19 = arith.constant 2 : index
    %c0_20 = arith.constant 0 : index
    %c0_21 = arith.constant 0 : index
    %17 = vector.load %arg2[%c2_19, %c0_20, %c0_21] : memref<5x13x32xf32, #tpu.memory_space<vmem>>, vector<1x13x32xf32>
    %18 = vector.shape_cast %17 : vector<1x13x32xf32> to vector<13x32xf32>
    %cst_22 = arith.constant dense<0.000000e+00> : vector<16x32xf32>
    %19 = tpu.matmul %16, %18, %cst_22 {dimension_numbers = #tpu.dot_dimension_numbers<[1], [0], [0], [1], [0, 0, 1, 1], [], []>} : vector<16x13xf32>, vector<13x32xf32>, vector<16x32xf32> -> vector<16x32xf32>
    %20 = arith.addf %15, %19 : vector<16x32xf32>
    %c3 = arith.constant 3 : index
    %c0_23 = arith.constant 0 : index
    %21 = vector.load %arg9[%c3, %c0_23] : memref<20x13xf32, #tpu.memory_space<vmem>>, vector<16x13xf32>
    %c3_24 = arith.constant 3 : index
    %c0_25 = arith.constant 0 : index
    %c0_26 = arith.constant 0 : index
    %22 = vector.load %arg2[%c3_24, %c0_25, %c0_26] : memref<5x13x32xf32, #tpu.memory_space<vmem>>, vector<1x13x32xf32>
    %23 = vector.shape_cast %22 : vector<1x13x32xf32> to vector<13x32xf32>
    %cst_27 = arith.constant dense<0.000000e+00> : vector<16x32xf32>
    %24 = tpu.matmul %21, %23, %cst_27 {dimension_numbers = #tpu.dot_dimension_numbers<[1], [0], [0], [1], [0, 0, 1, 1], [], []>} : vector<16x13xf32>, vector<13x32xf32>, vector<16x32xf32> -> vector<16x32xf32>
    %25 = arith.addf %20, %24 : vector<16x32xf32>
    %c4 = arith.constant 4 : index
    %c0_28 = arith.constant 0 : index
    %26 = vector.load %arg9[%c4, %c0_28] : memref<20x13xf32, #tpu.memory_space<vmem>>, vector<16x13xf32>
    %c4_29 = arith.constant 4 : index
    %c0_30 = arith.constant 0 : index
    %c0_31 = arith.constant 0 : index
    %27 = vector.load %arg2[%c4_29, %c0_30, %c0_31] : memref<5x13x32xf32, #tpu.memory_space<vmem>>, vector<1x13x32xf32>
    %28 = vector.shape_cast %27 : vector<1x13x32xf32> to vector<13x32xf32>
    %cst_32 = arith.constant dense<0.000000e+00> : vector<16x32xf32>
    %29 = tpu.matmul %26, %28, %cst_32 {dimension_numbers = #tpu.dot_dimension_numbers<[1], [0], [0], [1], [0, 0, 1, 1], [], []>} : vector<16x13xf32>, vector<13x32xf32>, vector<16x32xf32> -> vector<16x32xf32>
    %30 = arith.addf %25, %29 : vector<16x32xf32>
    %c0_33 = arith.constant 0 : index
    %c0_34 = arith.constant 0 : index
    %31 = vector.load %arg3[%c0_33, %c0_34] : memref<1x32xf32, #tpu.memory_space<vmem>>, vector<1x32xf32>
    %32 = vector.broadcast %31 : vector<1x32xf32> to vector<16x32xf32>
    %33 = arith.mulf %30, %32 : vector<16x32xf32>
    %c0_35 = arith.constant 0 : index
    %c0_36 = arith.constant 0 : index
    %34 = vector.load %arg4[%c0_35, %c0_36] : memref<1x32xf32, #tpu.memory_space<vmem>>, vector<1x32xf32>
    %35 = vector.broadcast %34 : vector<1x32xf32> to vector<16x32xf32>
    %36 = arith.addf %33, %35 : vector<16x32xf32>
    %cst_37 = arith.constant 0.000000e+00 : f32
    %37 = vector.broadcast %cst_37 : f32 to vector<16x32xf32>
    %38 = arith.maximumf %36, %37 : vector<16x32xf32>
    %c0_38 = arith.constant 0 : index
    %c0_39 = arith.constant 0 : index
    %39 = vector.load %arg10[%c0_38, %c0_39] : memref<16x32xf32, #tpu.memory_space<vmem>>, vector<16x32xf32>
    tpu.vector_store %arg10[%c0_38, %c0_39], %38 {strides = array<i32>} : memref<16x32xf32, #tpu.memory_space<vmem>>, vector<16x32xf32>,
    %c0_40 = arith.constant 0 : index
    %c0_41 = arith.constant 0 : index
    %40 = tpu.strided_load %arg10[%c0_40, %c0_41] {strides = array<i32: 2, 1>} : memref<16x32xf32, #tpu.memory_space<vmem>>, vector<8x32xf32>
    %c1_42 = arith.constant 1 : index
    %c0_43 = arith.constant 0 : index
    %41 = tpu.strided_load %arg10[%c1_42, %c0_43] {strides = array<i32: 2, 1>} : memref<16x32xf32, #tpu.memory_space<vmem>>, vector<8x32xf32>
    %42 = arith.maximumf %40, %41 : vector<8x32xf32>
    %cst_44 = arith.constant 0.000000e+00 : f32
    %43 = vector.broadcast %cst_44 : f32 to vector<12x32xf32>
    %c0_45 = arith.constant 0 : index
    %c0_46 = arith.constant 0 : index
    %44 = vector.load %arg11[%c0_45, %c0_46] : memref<12x32xf32, #tpu.memory_space<vmem>>, vector<12x32xf32>
    tpu.vector_store %arg11[%c0_45, %c0_46], %43 {strides = array<i32>} : memref<12x32xf32, #tpu.memory_space<vmem>>, vector<12x32xf32>,
    %c2_47 = arith.constant 2 : index
    %c0_48 = arith.constant 0 : index
    %45 = vector.load %arg11[%c2_47, %c0_48] : memref<12x32xf32, #tpu.memory_space<vmem>>, vector<8x32xf32>
    tpu.vector_store %arg11[%c2_47, %c0_48], %42 {strides = array<i32>} : memref<12x32xf32, #tpu.memory_space<vmem>>, vector<8x32xf32>,
    %cst_49 = arith.constant 0.000000e+00 : f32
    %46 = vector.broadcast %cst_49 : f32 to vector<8x64xf32>
    %c0_50 = arith.constant 0 : index
    %c0_51 = arith.constant 0 : index
    %47 = vector.load %arg11[%c0_50, %c0_51] : memref<12x32xf32, #tpu.memory_space<vmem>>, vector<8x32xf32>
    %c0_52 = arith.constant 0 : index
    %c0_53 = arith.constant 0 : index
    %c0_54 = arith.constant 0 : index
    %48 = vector.load %arg5[%c0_52, %c0_53, %c0_54] : memref<5x32x64xf32, #tpu.memory_space<vmem>>, vector<1x32x64xf32>
    %49 = vector.shape_cast %48 : vector<1x32x64xf32> to vector<32x64xf32>
    %cst_55 = arith.constant dense<0.000000e+00> : vector<8x64xf32>
    %50 = tpu.matmul %47, %49, %cst_55 {dimension_numbers = #tpu.dot_dimension_numbers<[1], [0], [0], [1], [0, 0, 1, 1], [], []>} : vector<8x32xf32>, vector<32x64xf32>, vector<8x64xf32> -> vector<8x64xf32>
    %51 = arith.addf %46, %50 : vector<8x64xf32>
    %c1_56 = arith.constant 1 : index
    %c0_57 = arith.constant 0 : index
    %52 = vector.load %arg11[%c1_56, %c0_57] : memref<12x32xf32, #tpu.memory_space<vmem>>, vector<8x32xf32>
    %c1_58 = arith.constant 1 : index
    %c0_59 = arith.constant 0 : index
    %c0_60 = arith.constant 0 : index
    %53 = vector.load %arg5[%c1_58, %c0_59, %c0_60] : memref<5x32x64xf32, #tpu.memory_space<vmem>>, vector<1x32x64xf32>
    %54 = vector.shape_cast %53 : vector<1x32x64xf32> to vector<32x64xf32>
    %cst_61 = arith.constant dense<0.000000e+00> : vector<8x64xf32>
    %55 = tpu.matmul %52, %54, %cst_61 {dimension_numbers = #tpu.dot_dimension_numbers<[1], [0], [0], [1], [0, 0, 1, 1], [], []>} : vector<8x32xf32>, vector<32x64xf32>, vector<8x64xf32> -> vector<8x64xf32>
    %56 = arith.addf %51, %55 : vector<8x64xf32>
    %c2_62 = arith.constant 2 : index
    %c0_63 = arith.constant 0 : index
    %57 = vector.load %arg11[%c2_62, %c0_63] : memref<12x32xf32, #tpu.memory_space<vmem>>, vector<8x32xf32>
    %c2_64 = arith.constant 2 : index
    %c0_65 = arith.constant 0 : index
    %c0_66 = arith.constant 0 : index
    %58 = vector.load %arg5[%c2_64, %c0_65, %c0_66] : memref<5x32x64xf32, #tpu.memory_space<vmem>>, vector<1x32x64xf32>
    %59 = vector.shape_cast %58 : vector<1x32x64xf32> to vector<32x64xf32>
    %cst_67 = arith.constant dense<0.000000e+00> : vector<8x64xf32>
    %60 = tpu.matmul %57, %59, %cst_67 {dimension_numbers = #tpu.dot_dimension_numbers<[1], [0], [0], [1], [0, 0, 1, 1], [], []>} : vector<8x32xf32>, vector<32x64xf32>, vector<8x64xf32> -> vector<8x64xf32>
    %61 = arith.addf %56, %60 : vector<8x64xf32>
    %c3_68 = arith.constant 3 : index
    %c0_69 = arith.constant 0 : index
    %62 = vector.load %arg11[%c3_68, %c0_69] : memref<12x32xf32, #tpu.memory_space<vmem>>, vector<8x32xf32>
    %c3_70 = arith.constant 3 : index
    %c0_71 = arith.constant 0 : index
    %c0_72 = arith.constant 0 : index
    %63 = vector.load %arg5[%c3_70, %c0_71, %c0_72] : memref<5x32x64xf32, #tpu.memory_space<vmem>>, vector<1x32x64xf32>
    %64 = vector.shape_cast %63 : vector<1x32x64xf32> to vector<32x64xf32>
    %cst_73 = arith.constant dense<0.000000e+00> : vector<8x64xf32>
    %65 = tpu.matmul %62, %64, %cst_73 {dimension_numbers = #tpu.dot_dimension_numbers<[1], [0], [0], [1], [0, 0, 1, 1], [], []>} : vector<8x32xf32>, vector<32x64xf32>, vector<8x64xf32> -> vector<8x64xf32>
    %66 = arith.addf %61, %65 : vector<8x64xf32>
    %c4_74 = arith.constant 4 : index
    %c0_75 = arith.constant 0 : index
    %67 = vector.load %arg11[%c4_74, %c0_75] : memref<12x32xf32, #tpu.memory_space<vmem>>, vector<8x32xf32>
    %c4_76 = arith.constant 4 : index
    %c0_77 = arith.constant 0 : index
    %c0_78 = arith.constant 0 : index
    %68 = vector.load %arg5[%c4_76, %c0_77, %c0_78] : memref<5x32x64xf32, #tpu.memory_space<vmem>>, vector<1x32x64xf32>
    %69 = vector.shape_cast %68 : vector<1x32x64xf32> to vector<32x64xf32>
    %cst_79 = arith.constant dense<0.000000e+00> : vector<8x64xf32>
    %70 = tpu.matmul %67, %69, %cst_79 {dimension_numbers = #tpu.dot_dimension_numbers<[1], [0], [0], [1], [0, 0, 1, 1], [], []>} : vector<8x32xf32>, vector<32x64xf32>, vector<8x64xf32> -> vector<8x64xf32>
    %71 = arith.addf %66, %70 : vector<8x64xf32>
    %c0_80 = arith.constant 0 : index
    %c0_81 = arith.constant 0 : index
    %72 = vector.load %arg6[%c0_80, %c0_81] : memref<1x64xf32, #tpu.memory_space<vmem>>, vector<1x64xf32>
    %73 = vector.broadcast %72 : vector<1x64xf32> to vector<8x64xf32>
    %74 = arith.mulf %71, %73 : vector<8x64xf32>
    %c0_82 = arith.constant 0 : index
    %c0_83 = arith.constant 0 : index
    %75 = vector.load %arg7[%c0_82, %c0_83] : memref<1x64xf32, #tpu.memory_space<vmem>>, vector<1x64xf32>
    %76 = vector.broadcast %75 : vector<1x64xf32> to vector<8x64xf32>
    %77 = arith.addf %74, %76 : vector<8x64xf32>
    %cst_84 = arith.constant 0.000000e+00 : f32
    %78 = vector.broadcast %cst_84 : f32 to vector<8x64xf32>
    %79 = arith.maximumf %77, %78 : vector<8x64xf32>
    %c0_85 = arith.constant 0 : index
    %c0_86 = arith.constant 0 : index
    %80 = vector.load %arg12[%c0_85, %c0_86] : memref<8x64xf32, #tpu.memory_space<vmem>>, vector<8x64xf32>
    tpu.vector_store %arg12[%c0_85, %c0_86], %79 {strides = array<i32>} : memref<8x64xf32, #tpu.memory_space<vmem>>, vector<8x64xf32>,
    %c0_87 = arith.constant 0 : index
    %c0_88 = arith.constant 0 : index
    %81 = tpu.strided_load %arg12[%c0_87, %c0_88] {strides = array<i32: 2, 1>} : memref<8x64xf32, #tpu.memory_space<vmem>>, vector<4x64xf32>
    %c1_89 = arith.constant 1 : index
    %c0_90 = arith.constant 0 : index
    %82 = tpu.strided_load %arg12[%c1_89, %c0_90] {strides = array<i32: 2, 1>} : memref<8x64xf32, #tpu.memory_space<vmem>>, vector<4x64xf32>
    %83 = arith.maximumf %81, %82 : vector<4x64xf32>
    %c0_91 = arith.constant 0 : index
    %c0_92 = arith.constant 0 : index
    %c0_93 = arith.constant 0 : index
    %84 = vector.load %arg8[%c0_91, %c0_92, %c0_93] : memref<1x4x64xf32, #tpu.memory_space<vmem>>, vector<1x4x64xf32>
    %85 = vector.shape_cast %84 : vector<1x4x64xf32> to vector<4x64xf32>
    %86 = vector.shape_cast %83 : vector<4x64xf32> to vector<1x4x64xf32>
    tpu.vector_store %arg8[%c0_91, %c0_92, %c0_93], %86 {strides = array<i32>} : memref<1x4x64xf32, #tpu.memory_space<vmem>>, vector<1x4x64xf32>,
    return
  }
  func.func @transform_0(%arg0: i32) -> (i32, i32, i32) {
    %c0_i32 = arith.constant 0 : i32
    %c0_i32_0 = arith.constant 0 : i32
    %c0_i32_1 = arith.constant 0 : i32
    return %arg0, %c0_i32, %c0_i32_0 : i32, i32, i32
  }
  func.func @transform_1(%arg0: i32) -> (i32, i32, i32) {
    %c0_i32 = arith.constant 0 : i32
    %c0_i32_0 = arith.constant 0 : i32
    %c0_i32_1 = arith.constant 0 : i32
    %c0_i32_2 = arith.constant 0 : i32
    return %c0_i32, %c0_i32_0, %c0_i32_1 : i32, i32, i32
  }
  func.func @transform_2(%arg0: i32) -> (i32, i32) {
    %c0_i32 = arith.constant 0 : i32
    %c0_i32_0 = arith.constant 0 : i32
    %c0_i32_1 = arith.constant 0 : i32
    return %c0_i32, %c0_i32_0 : i32, i32
  }
  func.func @transform_3(%arg0: i32) -> (i32, i32) {
    %c0_i32 = arith.constant 0 : i32
    %c0_i32_0 = arith.constant 0 : i32
    %c0_i32_1 = arith.constant 0 : i32
    return %c0_i32, %c0_i32_0 : i32, i32
  }
  func.func @transform_4(%arg0: i32) -> (i32, i32, i32) {
    %c0_i32 = arith.constant 0 : i32
    %c0_i32_0 = arith.constant 0 : i32
    %c0_i32_1 = arith.constant 0 : i32
    %c0_i32_2 = arith.constant 0 : i32
    return %c0_i32, %c0_i32_0, %c0_i32_1 : i32, i32, i32
  }
  func.func @transform_5(%arg0: i32) -> (i32, i32) {
    %c0_i32 = arith.constant 0 : i32
    %c0_i32_0 = arith.constant 0 : i32
    %c0_i32_1 = arith.constant 0 : i32
    return %c0_i32, %c0_i32_0 : i32, i32
  }
  func.func @transform_6(%arg0: i32) -> (i32, i32) {
    %c0_i32 = arith.constant 0 : i32
    %c0_i32_0 = arith.constant 0 : i32
    %c0_i32_1 = arith.constant 0 : i32
    return %c0_i32, %c0_i32_0 : i32, i32
  }
  func.func @transform_7(%arg0: i32) -> (i32, i32, i32) {
    %c0_i32 = arith.constant 0 : i32
    %c0_i32_0 = arith.constant 0 : i32
    %c0_i32_1 = arith.constant 0 : i32
    return %arg0, %c0_i32, %c0_i32_0 : i32, i32, i32
  }
}

</mosaic_0001>

<bundles_post_ra>
// kernel: tpu_custom_call.1
= control target key start
LH: loop header
LB: loop body
LE: loop exit
PB: predicated region body
PF: predicated region fallthrough
CT: control target
= control target key end

     0   :  { %12 = vsyncpa [#allocation7], 0  ;;  %s2064_s0 = inlined_call_operand.vmem [shape: f32[2,16,13], index: 0, kind: input, shape index: {}]   ;;  %s2065_s1 = inlined_call_operand.hbm [shape: f32[5,13,32], index: 1, kind: input, shape index: {}]   ;;  %s2066_s2 = inlined_call_operand.vmem [shape: f32[1,32], index: 2, kind: input, shape index: {}]   ;;  %s2067_s3 = inlined_call_operand.vmem [shape: f32[1,32], index: 3, kind: input, shape index: {}]   ;;  %s2068_s4 = inlined_call_operand.hbm [shape: f32[5,32,64], index: 4, kind: input, shape index: {}]   ;;  %s2069_s5 = inlined_call_operand.vmem [shape: f32[1,64], index: 5, kind: input, shape index: {}]   ;;  %s2070_s6 = inlined_call_operand.vmem [shape: f32[1,64], index: 6, kind: input, shape index: {}]   ;;  %s2071_s7 = inlined_call_operand.hbm [shape: f32[2,4,64], index: 7, kind: output, shape index: {}]  }
   0x1   :  { %13 = vsyncpa [#allocation10], 0 }
   0x2   :  { %14 = vsyncpa [#allocation8], 0 }
   0x3   :  { %16 = vsyncpa [#allocation8 + $0x1], 0  ;;  %s1808_s24 = smov 0   ;;  %s1810_s25 = smov 0  }
   0x4   :  { %s1812_s26 = smov 0   ;;  %s1814_s27 = smov 0  }
   0x5 LB: > { %s1829_s28 = sadd.s32 4294967295, %s1757_s27   ;;  %s1315_s29 = sadd.s32 4294967294, %s1757_s27   ;;  %s1757_s27 = sphi %s1814_s27, %s2093_s27   ;;  %s1753_s26 = sphi %s1812_s26, %s2092_s26   ;;  %s1749_s25 = sphi %s1810_s25, %s2091_s25   ;;  %s1745_s24 = sphi %s1808_s24, %s2090_s24  }
   0x6   : > { %s1833_s30 = sadd.s32 1, %s1757_s27   ;;  %s181_s8 = sadd.s32 1, %s1753_s26 }
   0x7   : > { %s178_s9 = ssub.s32 %s1757_s27, %s1833_s30  ;;  %p191_p0 = scmp.ne.s32.totalorder %s1753_s26, %s1749_s25 }
   0x8   : > { %p179_p1 = scmp.eq.s32.totalorder %s178_s9, 0  ;;  %p192_p2 = scmp.eq.s32.totalorder %s1829_s28, 1 }
   0x9   : > { %p197_p3 = scmp.ne.s32.totalorder %s1749_s25, %s1745_s24  ;;  %p198_p4 = scmp.eq.s32.totalorder %s1315_s29, 1 }
   0xa   : > { %s1844_s10 = scalar_select %p179_p1, %s1753_s26, %s181_s8  }
   0xb   : > { %p1846_p5 = por %p192_p2, %p191_p0  ;;  %p1850_p6 = por %p198_p4, %p197_p3 }
   0xc   : > { %2075 = sst [smem:[#allocation15_spill]] %s1844_s10  ;;  %p1316_p7 = scmp.ge.s32.totalorder %s1757_s27, 1 }
   0xd   : > { %s2076_s11 = scalar_select %p1846_p5, 1, 0 }
   0xe   : > { %s2077_s12 = scalar_select %p1850_p6, 1, 0 }
   0xf   : > { %p205_p8 = scmp.lt.s32.totalorder %s1757_s27, 3  ;;  %p2072_p9 = scmp.eq.s32.totalorder %s1829_s28, 0 }
  0x10   : > { %s1759_s14 = smov [#allocation6]   ;;  %s1760_s17 = smov [#allocation9]  }
  0x11   : > { %p1857_p10 = pnand %p1316_p7, %p205_p8  ;;  %s217_s15 = sshll.u32 %s1759_s14, 4  ;;  %s218_s15 = int_to_ptr.vmem [resolvable:$true] %s217_s15 }
  0x12   : > { %s236_s18 = sshll.u32 %s1760_s17, 4  ;;  %s1631_s21 = scalar_lea.hbm %s2065_s1, 1280  ;;  %s1869_s18 = int_to_ptr.vmem [resolvable:$true] %s236_s18 }
  0x13   : > { %s2078_s13 = scalar_select %p1857_p10, 1, 0 }
  0x14   : > { %p1575_p11 = pneg %p1857_p10  ;;  %p1632_p13 = scmp.ne.s32.totalorder %s2065_s1, %s1631_s21 }
  0x15   : > { %p1638_p3 = scmp.lt.u32.totalorder %s1631_s21, %s2065_s1 }
  0x16   : > { %p1865_p12 = pnand %p2072_p9, %p1575_p11 }
  0x18   : > { %p1633_p0 = pneg %p1865_p12 }
  0x1a   : > { %p1634_p1 = pnand %p1633_p0, %p1632_p13 }
  0x1c   : > { %p1635_p2 = pneg %p1634_p1 }
  0x1e   : > { %p1640_p4 = pnand %p1638_p3, %p1635_p2 }
  0x20   : > { %1643 = shalt.err (!%p1640_p4)
}
  0x21   : > { %s1644_s9 = scalar_lea.vmem %s218_s15, 1280  ;;  %p1652_p9 = scmp.lt.s32.totalorder %s218_s15, %s218_s15 }
  0x22   : > { %p1645_p7 = scmp.ne.s32.totalorder %s218_s15, %s1644_s9  ;;  %p1653_p6 = scmp.lt.s32.totalorder %s1644_s9, %s1644_s9 }
  0x24   : > { %p1647_p8 = pnand %p1645_p7, %p1633_p0  ;;  %p1654_p5 = por %p1653_p6, %p1652_p9 }
  0x26   : > { %p1648_p11 = pneg %p1647_p8 }
  0x28   : > { %p1655_p10 = pnand %p1654_p5, %p1648_p11 }
  0x2a   : > { %1658 = shalt.err (!%p1655_p10)
}
  0x2b   : > { %s1761_s14 = smov 128   ;;  %s1762_s17 = smov 8  }
  0x2c   : > { %1578 = dma.hbm_to_vmem [thread:$0]  (!%p1865_p12), %s2065_s1, 1280, %s218_s15, [#allocation7], %s1761_s14, %s1761_s14, %s1762_s17  }
  0x2d   : > { %s1659_s23 = scalar_lea.hbm %s2068_s4, 2560 }
  0x2e   : > { %p1660_p13 = scmp.ne.s32.totalorder %s2068_s4, %s1659_s23  ;;  %p1666_p9 = scmp.lt.u32.totalorder %s1659_s23, %s2068_s4 }
  0x30   : > { %p1662_p5 = pnand %p1660_p13, %p1633_p0 }
  0x32   : > { %p1663_p6 = pneg %p1662_p5 }
  0x34   : > { %p1668_p10 = pnand %p1666_p9, %p1663_p6 }
  0x36   : > { %1671 = shalt.err (!%p1668_p10)
}
  0x37   : > { %s1672_s15 = scalar_lea.vmem %s1869_s18, 2560  ;;  %p1680_p4 = scmp.lt.s32.totalorder %s1869_s18, %s1869_s18 }
  0x38   : > { %p1673_p1 = scmp.ne.s32.totalorder %s1869_s18, %s1672_s15  ;;  %p1681_p7 = scmp.lt.s32.totalorder %s1672_s15, %s1672_s15 }
  0x3a   : > { %p1675_p2 = pnand %p1673_p1, %p1633_p0  ;;  %p1682_p8 = por %p1681_p7, %p1680_p4 }
  0x3c   : > { %p1676_p3 = pneg %p1675_p2 }
  0x3e   : > { %p1683_p11 = pnand %p1682_p8, %p1676_p3 }
  0x40   : > { %1686 = shalt.err (!%p1683_p11)
}
  0x41   : > { %1581 = dma.hbm_to_vmem [thread:$0]  (!%p1865_p12), %s2068_s4, 2560, %s1869_s18, [#allocation10], %s1761_s14, %s1761_s14, %s1762_s17  }
  0x42   : > { %p2080_p13 = scmp.ne.s32.totalorder %s2078_s13, 0 }
  0x43   : > { %p2081_p5 = scmp.eq.s32.totalorder (!%p2080_p13), %s1829_s28, 0 }
  0x44   : > { %266 = sbr.rel (%p2080_p13) target bundleno = 634 (0x27a), region = 48 }
  0x4b   : > { %1732 = dma.done.wait (%p2081_p5), [#allocation7], 1280   ;;  %p2082_p0 = pmov %p2081_p5 }
  0x4d   : > { %1734 = vsyncadd (%p2082_p0), [#allocation7], 4294966016  ;;  %p2083_p6 = pmov %p2082_p0 }
  0x4e   : > { %p2084_p9 = pmov %p2082_p0 }
  0x4f   : > { %1736 = dma.done.wait (%p2083_p6), [#allocation10], 2560  }
  0x50   : > { %1738 = vsyncadd (%p2084_p9), [#allocation10], 4294964736  ;;  %p302_p10 = scmp.lt.s32.totalorder %s1829_s28, 1  ;;  %vm307_vm0 = vcmask 105472   ;;  %vm310_vm1 = vcmask 101376   ;;  %v1763_v0 = vmov 0.0  }
  0x51   : > { %308 = vst.msk [vmem:[#allocation2] sm:$0xff] %vm307_vm0, %v1763_v0  ;;  %309 = vst.msk [vmem:[#allocation2 + $0x8] sm:$0xff] %vm307_vm0, %v1763_v0  ;;  %vm331_vm2 = vcmask 1044480   ;;  %vm1764_vm3 = vmmov 1   ;;  %v323_v2 = vld [vmem:[#allocation6 + $0x10] sm:$0xff]  ;;  %v318_v7 = vld [vmem:[#allocation6] sm:$0xff] }
  0x52   : > { %s303_s16 = scalar_select %p302_p10, %s1829_s28, 1  ;;  %311 = vst.msk [vmem:[#allocation2 + $0x10] sm:$0xf] %vm310_vm1, %v1763_v0  ;;  %vm1938_vm4 = vmpackc.low %vm331_vm2, %vm1764_vm3  ;;  %v324_v3 = vld [vmem:[#allocation6 + $0x18] sm:$0x1f]  ;;  %v497_v10 = vld [vmem:[#allocation6 + $0x20] sm:$0xff] }
  0x53   : > { %v1490_v5 = vpack.c.bf16 %v324_v3, %v323_v2  ;;  %v319_v8 = vld [vmem:[#allocation6 + $0x8] sm:$0x1f]  ;;  %v588_v16 = vld [vmem:[#allocation6 + $0x30] sm:$0xff]  ;;  %v589_v17 = vld [vmem:[#allocation6 + $0x38] sm:$0x1f]  ;;  %vm787_vm5 = vcmask 261120  }
  0x54   : > { %s1354_s13 = sshll.u32 %s303_s16, 4  ;;  %v1496_v9 = vpack.c.bf16 %v319_v8, %v318_v7  ;;  %v498_v11 = vld [vmem:[#allocation6 + $0x28] sm:$0x1f]  ;;  %v1508_v20 = vpack.c.bf16 %v589_v17, %v588_v16  ;;  %v679_v21 = vld [vmem:[#allocation6 + $0x40] sm:$0xff]  ;;  %794 = vst.msk [vmem:[#allocation4] sm:$0xff] %vm787_vm5, %v1763_v0  ;;  %v799_v29 = vld [vmem:[#allocation9] sm:$0xff] }
  0x55   : > { %s306_s17 = scalar_lea.vmem %s2064_s0, %s1354_s13  ;;  %1492 = vmatprep.subr.msk.bf16.mxu0 %vm1938_vm4, %v1490_v5  ;;  %v1502_v14 = vpack.c.bf16 %v498_v11, %v497_v10  ;;  %v680_v22 = vld [vmem:[#allocation6 + $0x48] sm:$0x1f]  ;;  %v800_v30 = vld [vmem:[#allocation9 + $0x8] sm:$0xff]  ;;  %v805_v31 = vld [vmem:[#allocation9 + $0x20] sm:$0xff]  ;;  %vm795_vm6 = vcmask 257024   ;;  %v1765_v32 = vmov 0.0|0.0  }
  0x56   : > { %v312_v4 = vld [vmem:[%s306_s17] sm:$0xff]  ;;  %v313_v6 = vld [vmem:[%s306_s17 + $0x8] sm:$0xff]  ;;  %1495 = vmatpush3.bf16.msk.msra.mxu0 %vm1938_vm4, %v1490_v5  ;;  %v1514_v25 = vpack.c.bf16 %v680_v22, %v679_v21  ;;  %1526 = vmatprep.subr.bf16.mxu1 %v1765_v32  ;;  %v1527_v33 = vpack.c.bf16 %v800_v30, %v799_v29  ;;  %v806_v34 = vld [vmem:[#allocation9 + $0x28] sm:$0xff]  ;;  %796 = vst.msk [vmem:[#allocation4 + $0x8] sm:$0xf] %vm795_vm6, %v1763_v0  ;;  %vm1766_vm7 = vmmov 0  }
  0x57   : > { %314 = vst.msk [vmem:[#allocation2 + $0x2] sm:$0xff] %vm307_vm0, %v312_v4  ;;  %315 = vst.msk [vmem:[#allocation2 + $0xa] sm:$0xff] %vm307_vm0, %v313_v6  ;;  %1498 = vmatprep.subr.msk.bf16.mxu0 %vm1938_vm4, %v1496_v9  ;;  %v801_v35 = vld [vmem:[#allocation9 + $0x10] sm:$0xff]  ;;  %v802_v36 = vld [vmem:[#allocation9 + $0x18] sm:$0xff]  ;;  %v1521_v37 = vpack.c.bf16 %v806_v34, %v805_v31  ;;  %1454 = vmatprep.mubr.msk.f32.mxu1 %vm1766_vm7, %v1763_v0  ;;  %s299_s10 = sand.u32 1, %s1749_s25   ;;  %vm1212_vm8 = vcmask 523264  }
  0x58   : > { %v807_v38 = vld [vmem:[#allocation9 + $0x30] sm:$0xff]  ;;  %v808_v39 = vld [vmem:[#allocation9 + $0x38] sm:$0xff]  ;;  %1528 = vmatpush3.bf16.msra.mxu1 %v1527_v33  ;;  %v1530_v40 = vpack.c.bf16 %v802_v36, %v801_v35  ;;  %v957_v55 = vld [vmem:[#allocation9 + $0x40] sm:$0xff]  ;;  %s1323_s19 = sshll.u32 %s299_s10, 2  ;;  %s1351_s16 = sshll.u32 %s1829_s28, 6  ;;  %vm1218_vm9 = vcmask 519168  }
  0x59   : > { %1529 = vmatprep.subr.bf16.mxu1 %v1765_v32  ;;  %v1524_v41 = vpack.c.bf16 %v808_v39, %v807_v38  ;;  %v1341_v42 = vld [vmem:[%s2066_s2] ss:$0 sm:$0xff]  ;;  %v958_v56 = vld [vmem:[#allocation9 + $0x48] sm:$0xff]  ;;  %v960_v59 = vld [vmem:[#allocation9 + $0x58] sm:$0xff]  ;;  %s301_s13 = scalar_lea.vmem [#allocation11], %s1323_s19  ;;  %s2022_s20 = scalar_lea.hbm %s2071_s7, %s1351_s16 }
  0x5a   : > { %v1342_v44 = vld [vmem:[%s2067_s3] ss:$0 sm:$0xff]  ;;  %v1533_v57 = vpack.c.bf16 %v958_v56, %v957_v55  ;;  %v1037_v63 = vld [vmem:[#allocation9 + $0x60] sm:$0xff]  ;;  %v1038_v1 = vld [vmem:[#allocation9 + $0x68] sm:$0xff]  ;;  %s1234_s18 = sshll.u32 %s301_s13, 4  ;;  %s1221_s21 = scalar_lea.sflag [#allocation8], %s299_s10  ;;  %s2024_s18 = int_to_ptr.vmem [resolvable:$true] %s1234_s18 }
  0x5b   : > { %v959_v58 = vld [vmem:[#allocation9 + $0x50] sm:$0xff]  ;;  %v1539_v2 = vpack.c.bf16 %v1038_v1, %v1037_v63  ;;  %v1040_v4 = vld [vmem:[#allocation9 + $0x78] sm:$0xff]  ;;  %v1117_v7 = vld [vmem:[#allocation9 + $0x80] sm:$0xff]  ;;  %s1687_s22 = scalar_lea.vmem %s2024_s18, 64  ;;  %p2087_p1 = scmp.ne.s32.totalorder %s2076_s11, 0 }
  0x5c   : > { %1531 = vmatpush3.bf16.msra.mxu1 %v1530_v40  ;;  %v1536_v62 = vpack.c.bf16 %v960_v59, %v959_v58  ;;  %v1039_v3 = vld [vmem:[#allocation9 + $0x70] sm:$0xff]  ;;  %v1118_v8 = vld [vmem:[#allocation9 + $0x88] sm:$0xff]  ;;  %v1120_v11 = vld [vmem:[#allocation9 + $0x98] sm:$0xff]  ;;  %p1688_p12 = scmp.ne.s32.totalorder %s2024_s18, %s1687_s22  ;;  %s1767_s28 = smov [#allocation11]  }
  0x5d   : > { %1532 = vmatprep.subr.bf16.mxu1 %v1765_v32  ;;  %v1542_v6 = vpack.c.bf16 %v1040_v4, %v1039_v3  ;;  %v1119_v10 = vld [vmem:[#allocation9 + $0x90] sm:$0xff]  ;;  %s1691_s23 = sshll.u32 %s1767_s28, 4  ;;  %s1692_s23 = int_to_ptr.vmem [resolvable:$false] %s1691_s23 }
  0x5e   : > { %v320_v12 = vld [vmem:[#allocation2 + $0x1] sm:$0xff]  ;;  %v321_v15 = vld [vmem:[#allocation2 + $0x9] sm:$0xff]  ;;  %p1689_p2 = pnand %p1688_p12, %p2087_p1  ;;  %s1693_s29 = scalar_lea.vmem %s1692_s23, 128 }
  0x5f   : > { %v316_v13 = vld [vmem:[#allocation2] sm:$0xff]  ;;  %1404 = vmatprep.mubr.msk.f32.mxu0 %vm307_vm0, %v320_v12  ;;  %v317_v18 = vld [vmem:[#allocation2 + $0x8] sm:$0xff]  ;;  %p1694_p4 = scmp.lt.s32.totalorder %s2024_s18, %s1692_s23  ;;  %p1695_p7 = scmp.lt.s32.totalorder %s1693_s29, %s1687_s22 }
  0x60   : > { %1405 = vmatmul.mubr.msk.f32.vlgmr.msra.gmra.mrb[0].mxu0 %vm307_vm0, %v321_v15  ;;  %v494_v19 = vld [vmem:[#allocation2 + $0x2] sm:$0xff]  ;;  %v495_v23 = vld [vmem:[#allocation2 + $0xa] sm:$0xff]  ;;  %p1690_p3 = pneg %p1689_p2 }
  0x61   : > { %1501 = vmatpush3.bf16.msk.msra.mxu0 %vm1938_vm4, %v1496_v9  ;;  %1411 = vmatprep.mubr.msk.f32.mxu0 %vm307_vm0, %v316_v13  ;;  %v585_v24 = vld [vmem:[#allocation2 + $0x3] sm:$0xff]  ;;  %v586_v26 = vld [vmem:[#allocation2 + $0xb] sm:$0xff]  ;;  %v1545_v9 = vpack.c.bf16 %v1118_v8, %v1117_v7  ;;  %v1548_v13 = vpack.c.bf16 %v1120_v11, %v1119_v10  ;;  %p1696_p8 = por %p1695_p7, %p1694_p4 }
  0x62   : > { %1504 = vmatprep.subr.msk.bf16.mxu0 %vm1938_vm4, %v1502_v14  ;;  %v676_v27 = vld [vmem:[#allocation2 + $0x4] sm:$0xff]  ;;  %v677_v28 = vld [vmem:[#allocation2 + $0xc] sm:$0xff] }
  0x63   : > { %p1697_p11 = pnand %p1696_p8, %p1690_p3 }
  0x68   : > { %1412 = vmatmul.mubr.msk.f32.vlgmr.msra.gmra.mrb[0].mxu0 %vm307_vm0, %v317_v18  ;;  %v1348_v18 = vld [vmem:[%s2069_s5] ss:$0 sm:$0xff] }
  0x69   : > { %1507 = vmatpush3.bf16.msk.msra.mxu0 %vm1938_vm4, %v1502_v14  ;;  %1418 = vmatprep.mubr.msk.f32.mxu0 %vm307_vm0, %v494_v19 }
  0x6a   : > { %1510 = vmatprep.subr.msk.bf16.mxu0 %vm1938_vm4, %v1508_v20 }
  0x70   : > { %1419 = vmatmul.mubr.msk.f32.vlgmr.msra.gmra.mrb[0].mxu0 %vm307_vm0, %v495_v23 }
  0x71   : > { %1513 = vmatpush3.bf16.msk.msra.mxu0 %vm1938_vm4, %v1508_v20  ;;  %1425 = vmatprep.mubr.msk.f32.mxu0 %vm307_vm0, %v585_v24 }
  0x72   : > { %1516 = vmatprep.subr.msk.bf16.mxu0 %vm1938_vm4, %v1514_v25 }
  0x78   : > { %1426 = vmatmul.mubr.msk.f32.vlgmr.msra.gmra.mrb[0].mxu0 %vm307_vm0, %v586_v26 }
  0x79   : > { %1519 = vmatpush3.bf16.msk.msra.mxu0 %vm1938_vm4, %v1514_v25  ;;  %1432 = vmatprep.mubr.msk.f32.mxu0 %vm307_vm0, %v676_v27 }
  0x7a   : > { %1520 = vmatprep.subr.bf16.mxu0 %v1765_v32 }
  0x80   : > { %1433 = vmatmul.mubr.msk.f32.vlgmr.msra.gmra.mrb[0].mxu0 %vm307_vm0, %v677_v28 }
  0x81   : > { %1443 = vmatprep.mubr.msk.f32.mxu0 %vm1766_vm7, %v1763_v0  ;;  %1522 = vmatpush3.bf16.msra.mxu0 %v1521_v37 }
  0x82   : > { %1523 = vmatprep.subr.bf16.mxu0 %v1765_v32 }
  0x85   : > { %1525 = vmatpush3.bf16.msra.mxu0 %v1524_v41 }
 0x153   : > { %v1434_v43 = vpop.f32.mrb[0].mxu0 }
 0x154   : > { %v775_v45 = vmul.f32 %v1434_v43, %v1341_v42  ;;  %v756_v46 = vpop.f32.mrb[1].mxu0 }
 0x155   : > { %v774_v47 = vmul.f32 %v1341_v42, %v756_v46 }
 0x156   : > { %v784_v48 = vadd.f32 %v1342_v44, %v775_v45 }
 0x157   : > { %v783_v49 = vadd.f32 %v1342_v44, %v774_v47 }
 0x158   : > { %v786_v50 = vmax.f32 %v784_v48, 0.0 }
 0x159   : > { %v785_v51 = vmax.f32 %v783_v49, 0.0 }
 0x15a   : > { %789 = vst.msk [vmem:[#allocation3 + $0x8] sm:$0xff] %vm787_vm5, %v786_v50 }
 0x15b   : > { %788 = vst.msk [vmem:[#allocation3] sm:$0xff] %vm787_vm5, %v785_v51 }
 0x162   : > { %v790_v52 = vld [vmem:[#allocation3] ss:$2 sm:$0xff]  ;;  %v792_v53 = vld [vmem:[#allocation3 + $0x1] ss:$2 sm:$0xff] }
 0x163   : > { %v793_v54 = vmax.f32 %v790_v52, %v792_v53 }
 0x165   : > { %797 = vst.msk [vmem:[#allocation4 + $0x2] sm:$0xff] %vm787_vm5, %v793_v54 }
 0x16c   : > { %v803_v60 = vld [vmem:[#allocation4 + $0x1] sm:$0xff] }
 0x16d   : > { %v798_v61 = vld [vmem:[#allocation4] sm:$0xff]  ;;  %1444 = vmatmul.mubr.msk.f32.vlgmr.msra.gmra.mrb[2].mxu0 %vm787_vm5, %v803_v60 }
 0x16e   : > { %1455 = vmatmul.mubr.msk.f32.vlgmr.msra.gmra.mrb[0].mxu1 %vm787_vm5, %v798_v61  ;;  %v955_v5 = vld [vmem:[#allocation4 + $0x2] sm:$0xff] }
 0x16f   : > { %1534 = vmatpush3.bf16.msra.mxu1 %v1533_v57  ;;  %1465 = vmatprep.mubr.msk.f32.mxu1 %vm1766_vm7, %v1763_v0  ;;  %v1035_v12 = vld [vmem:[#allocation4 + $0x3] sm:$0xff] }
 0x170   : > { %1535 = vmatprep.subr.bf16.mxu1 %v1765_v32  ;;  %v1115_v14 = vld [vmem:[#allocation4 + $0x4] sm:$0xff] }
 0x173   : > { %1537 = vmatpush3.bf16.msra.mxu1 %v1536_v62 }
 0x174   : > { %1538 = vmatprep.subr.bf16.mxu1 %v1765_v32 }
 0x176   : > { %1466 = vmatmul.mubr.msk.f32.vlgmr.msra.gmra.mrb[0].mxu1 %vm787_vm5, %v955_v5 }
 0x177   : > { %1540 = vmatpush3.bf16.msra.mxu1 %v1539_v2  ;;  %1476 = vmatprep.mubr.msk.f32.mxu1 %vm1766_vm7, %v1763_v0 }
 0x178   : > { %1541 = vmatprep.subr.bf16.mxu1 %v1765_v32 }
 0x17b   : > { %1543 = vmatpush3.bf16.msra.mxu1 %v1542_v6 }
 0x17c   : > { %1544 = vmatprep.subr.bf16.mxu1 %v1765_v32 }
 0x17e   : > { %1477 = vmatmul.mubr.msk.f32.vlgmr.msra.gmra.mrb[0].mxu1 %vm787_vm5, %v1035_v12 }
 0x17f   : > { %1546 = vmatpush3.bf16.msra.mxu1 %v1545_v9  ;;  %1487 = vmatprep.mubr.msk.f32.mxu1 %vm1766_vm7, %v1763_v0  ;;  %v1349_v0 = vld [vmem:[%s2070_s6] ss:$0 sm:$0xff] }
 0x180   : > { %1547 = vmatprep.subr.bf16.mxu1 %v1765_v32 }
 0x183   : > { %1549 = vmatpush3.bf16.msra.mxu1 %v1548_v13 }
 0x186   : > { %1488 = vmatmul.mubr.msk.f32.vlgmr.msra.gmra.mrb[0].mxu1 %vm787_vm5, %v1115_v14 }
 0x240   : > { %v878_v15 = vpop.f32.mrb[2].mxu0 }
 0x241   : > { %v1445_v16 = vpop.f32.mrb[3].mxu0 }
 0x259   : > { %v1190_v17 = vpop.f32.mrb[0].mxu1 }
 0x25a   : > { %v1550_v19 = vadd.f32 %v1190_v17, %v878_v15  ;;  %v1489_v20 = vpop.f32.mrb[1].mxu1 }
 0x25c   : > { %v1202_v21 = vmul.f32 %v1550_v19, %v1348_v18 }
 0x25e   : > { %v1210_v22 = vadd.f32 %v1349_v0, %v1202_v21 }
 0x260   : > { %v1211_v23 = vmax.f32 %v1210_v22, 0.0 }
 0x262   : > { %1213 = vst.msk [vmem:[#allocation5] sm:$0xff] %vm1212_vm8, %v1211_v23 }
 0x269   : > { %v1214_v24 = vld [vmem:[#allocation5] ss:$2 sm:$0xf]  ;;  %v1216_v25 = vld [vmem:[#allocation5 + $0x1] ss:$2 sm:$0xf] }
 0x26a   : > { %v1217_v26 = vmax.f32 %v1214_v24, %v1216_v25 }
 0x26c   : > { %1219 = vst.msk [vmem:[%s301_s13] sm:$0xf] %vm1218_vm9, %v1217_v26 }
 0x26d   : > { %1700 = shalt.err (!%p1697_p11)
}
 0x26e   : > { %s1701_s8 = scalar_lea.hbm %s2022_s20, 64  ;;  %s1705_s10 = scalar_lea.hbm %s2071_s7, 128 }
 0x26f   : > { %p1702_p13 = scmp.ne.s32.totalorder %s2022_s20, %s1701_s8  ;;  %p1706_p6 = scmp.lt.u32.totalorder %s2022_s20, %s2071_s7 }
 0x270   : > { %p1707_p9 = scmp.lt.u32.totalorder %s1705_s10, %s1701_s8  ;;  %p1709_p12 = scmp.lt.u32.totalorder %s1701_s8, %s2022_s20 }
 0x271   : > { %p1703_p5 = pnand %p1702_p13, %p2087_p1 }
 0x272   : > { %p1708_p10 = por %p1707_p9, %p1706_p6 }
 0x273   : > { %p1704_p0 = pneg %p1703_p5 }
 0x274   : > { %p1710_p2 = por %p1709_p12, %p1708_p10 }
 0x276   : > { %p1711_p3 = pnand %p1710_p2, %p1704_p0 }
 0x278   : > { %1714 = shalt.err (!%p1711_p3)
}
 0x279   : > { %1573 = dma.vmem_to_hbm [thread:$0]  (%p2087_p1), %s2024_s18, 64, %s2022_s20, %s1221_s21  }
 0x27a PF: > { %p1590_p4 = scmp.ge.s32.totalorder %s1757_s27, 2  ;;  %s1246_s13 = sand.u32 1, %s1745_s24  }
 0x27b   : > { %p2088_p7 = scmp.ne.s32.totalorder %s2077_s12, 0  ;;  %s1247_s14 = scalar_lea.sflag [#allocation8], %s1246_s13 }
 0x27d   : > { %p1583_p8 = pnand %p1590_p4, %p2088_p7 }
 0x27f   : > { %1740 = dma.done.wait (!%p1583_p8), %s1247_s14, 64  }
 0x280   : > { %1742 = vsyncadd (!%p1583_p8), %s1247_s14, 4294967232  ;;  %s2089_s17 = sld [smem:[#allocation15_spill]]  ;;  %p19_p11 = scmp.ge.s32.totalorder %s1833_s30, 4  }
 0x281   : > { %s2090_s24 = smov %s1749_s25  ;;  %s2091_s25 = smov %s1753_s26 }
 0x282   : > { %s2093_s27 = smov %s1833_s30  ;;  %21 = sbr.rel (!%p19_p11) target bundleno = 5 (0x5), region = 102 }
 0x286   : > { %s2092_s26 = smov %s2089_s17 }
 0x289   :  { %1252 = vsyncpa [#allocation7], 1 }
 0x28a   :  { %1254 = vsyncpa [#allocation7 + $0x1], 1 }
 0x28b   :  { %1255 = vsyncpa [#allocation10], 1 }
 0x28c   :  { %1256 = vsyncpa [#allocation8], 1 }
 0x28d   :  { %1258 = vsyncpa [#allocation8 + $0x1], 1 }

</bundles_post_ra>
